<compile_context>
chip_gen: v5e
topology: v5e:2x2
jax: 0.10.0
libtpu: 0.0.40
codegen_flags: <defaults>
</compile_context>

<pallas_src>
import jax
import jax.numpy as jnp
from jax.experimental import pallas as pl
from jax.experimental.pallas import tpu as pltpu


def _round_up(x, m):
    return ((x + m - 1) // m) * m


def _classifier_kernel(x_ref, w_ref, b_ref, o_ref):
    # x_ref: (tm, C)       VMEM  activation tile (pipelined over the batch grid)
    # w_ref: (C, Kpad)     VMEM  pre-transposed, lane-dense weight (resident)
    # b_ref: (1, Kpad)     VMEM  padded f32 bias (resident)
    # o_ref: (tm, K)       VMEM  unpadded output tile (K = n_classes)
    acc = jnp.dot(x_ref[...], w_ref[...], preferred_element_type=jnp.float32)
    acc = acc + b_ref[...]                       # f32 bias add on full vregs
    k = o_ref.shape[1]
    o_ref[...] = acc[:, :k].astype(o_ref.dtype)  # drop padded classes pre-store


def prepare_classifier_params(weight, bias, compute_dtype=None):
    """One-time parameter prep (done at init, NOT per forward call).

    * Transposes the PyTorch (K, C) weight to (C, Kpad) with K padded up to a
      multiple of 128 lanes -> lane-dense resident MXU operand, no in-kernel
      transpose.
    * Optionally casts the weight to `compute_dtype` (e.g. bf16) once here,
      so no per-call weight cast is needed.
    * Bias is kept/padded in f32 so the in-kernel bias add stays f32.
    """
    k, c = weight.shape
    kpad = _round_up(max(k, 1), 128)
    w_t = jnp.zeros((c, kpad), weight.dtype).at[:, :k].set(weight.T)
    if compute_dtype is not None:
        w_t = w_t.astype(compute_dtype)
    b_pad = jnp.zeros((1, kpad), jnp.float32).at[0, :k].set(
        bias.astype(jnp.float32))
    return w_t, b_pad


def classifier_1fc(x, w_t, b_pad, n_classes):
    """Pallas forward pass of Classifier_1fc (droprate=0.0 path).

    x:      (N, n_channels)          activations
    w_t:    (n_channels, Kpad)       pre-transposed, padded weight (init-time)
    b_pad:  (1, Kpad)                padded f32 bias (init-time)
    returns (N, n_classes)           in x's original dtype
    """
    n, c = x.shape
    kpad = w_t.shape[1]
    out_dtype = x.dtype

    # Only cast x if the weight was prepared in a different compute dtype
    # (weight cast itself already happened once at init).
    if x.dtype != w_t.dtype:
        x = x.astype(w_t.dtype)

    sub = 16 if x.dtype == jnp.bfloat16 else 8
    # Mem-bound kernel: large batch tiles (up to 2048 rows) amortize the
    # ~0.35us/step overhead; cap so the grid keeps >=2 steps for v7x's 2 TCs.
    tm = max(sub, min(2048, _round_up(pl.cdiv(n, 2), sub)))
    grid = (pl.cdiv(n, tm),)

    bytes_accessed = int(
        x.size * x.dtype.itemsize
        + w_t.size * w_t.dtype.itemsize
        + b_pad.size * b_pad.dtype.itemsize
        + n * n_classes * out_dtype.itemsize)

    out = pl.pallas_call(
        _classifier_kernel,
        out_shape=jax.ShapeDtypeStruct((n, n_classes), out_dtype),
        grid_spec=pltpu.PrefetchScalarGridSpec(
            num_scalar_prefetch=0,
            grid=grid,
            in_specs=[
                pl.BlockSpec((tm, c), lambda i: (i, 0)),       # x (pipelined)
                pl.BlockSpec((c, kpad), lambda i: (0, 0)),     # weight (resident)
                pl.BlockSpec((1, kpad), lambda i: (0, 0)),     # bias (resident)
            ],
            out_specs=pl.BlockSpec((tm, n_classes), lambda i: (i, 0)),
        ),
        compiler_params=pltpu.CompilerParams(
            dimension_semantics=("parallel",),   # v7x: shard batch over 2 TCs
        ),
        cost_estimate=pl.CostEstimate(
            flops=2 * n * c * kpad,
            transcendentals=0,
            bytes_accessed=bytes_accessed),
    )(x, w_t, b_pad)

    return out


def xavier_normal(key, shape):
    # nn.init.xavier_normal_ for a Linear weight of shape (fan_out, fan_in)
    fan_out, fan_in = shape
    std = (2.0 / (fan_in + fan_out)) ** 0.5
    return std * jax.random.normal(key, shape, dtype=jnp.float32)


if __name__ == "__main__":
    # Module config: n_channels=32 features in, n_classes=4 out, droprate=0.0
    n_channels = 32
    n_classes = 4
    batch = 16

    key = jax.random.PRNGKey(0)
    kx, kw = jax.random.split(key)

    x = jax.random.normal(kx, (batch, n_channels), dtype=jnp.float32)
    weight = xavier_normal(kw, (n_classes, n_channels))   # PyTorch Linear layout
    bias = jnp.zeros((n_classes,), dtype=jnp.float32)     # bias.data.zero_()

    ref = x @ weight.T + bias

    # f32 path: init-time transpose+pad, unpadded output, f32 accumulate.
    w_t, b_pad = prepare_classifier_params(weight, bias)
    out = classifier_1fc(x, w_t, b_pad, n_classes)
    jax.block_until_ready(out)
    assert out.shape == (batch, n_classes)
    assert out.dtype == x.dtype
    assert jnp.allclose(out, ref, atol=1e-5, rtol=1e-5)

    # bf16-weight path (cast cached at init, not per call); f32 accumulation.
    w_t_bf16, b_pad2 = prepare_classifier_params(weight, bias,
                                                 compute_dtype=jnp.bfloat16)
    out_bf16 = classifier_1fc(x, w_t_bf16, b_pad2, n_classes)
    jax.block_until_ready(out_bf16)
    assert out_bf16.shape == (batch, n_classes)
    assert jnp.allclose(out_bf16, ref, atol=5e-2, rtol=5e-2)

    print("KERNEL_OK")
</pallas_src>

<mosaic_0001>
module attributes {stable_mosaic.version = 11 : i64} {
  func.func @_classifier_kernel(%arg0: i32, %arg1: memref<8x32xf32, #tpu.memory_space<vmem>>, %arg2: memref<32x128xf32, #tpu.memory_space<vmem>>, %arg3: memref<1x128xf32, #tpu.memory_space<vmem>>, %arg4: memref<8x4xf32, #tpu.memory_space<vmem>>) attributes {dimension_semantics = [#tpu.dimension_semantics<parallel>], iteration_bounds = array<i64: 2>, scalar_prefetch = 0 : i64, scratch_operands = 0 : i64, tpu.core_type = #tpu.core_type<tc>, window_params = [{transform_indices = @transform_0, window_bounds = array<i64: 8, 32>}, {pipeline_mode = #tpu.pipeline_mode<synchronous>, transform_indices = @transform_1, window_bounds = array<i64: 32, 128>}, {pipeline_mode = #tpu.pipeline_mode<synchronous>, transform_indices = @transform_2, window_bounds = array<i64: 1, 128>}, {transform_indices = @transform_3, window_bounds = array<i64: 8, 4>}]} {
    %c0 = arith.constant 0 : index
    %c0_0 = arith.constant 0 : index
    %0 = vector.load %arg1[%c0, %c0_0] : memref<8x32xf32, #tpu.memory_space<vmem>>, vector<8x32xf32>
    %c0_1 = arith.constant 0 : index
    %c0_2 = arith.constant 0 : index
    %1 = vector.load %arg2[%c0_1, %c0_2] : memref<32x128xf32, #tpu.memory_space<vmem>>, vector<32x128xf32>
    %cst = arith.constant dense<0.000000e+00> : vector<8x128xf32>
    %2 = tpu.matmul %0, %1, %cst {dimension_numbers = #tpu.dot_dimension_numbers<[1], [0], [0], [1], [0, 0, 1, 1], [], []>} : vector<8x32xf32>, vector<32x128xf32>, vector<8x128xf32> -> vector<8x128xf32>
    %c0_3 = arith.constant 0 : index
    %c0_4 = arith.constant 0 : index
    %3 = vector.load %arg3[%c0_3, %c0_4] : memref<1x128xf32, #tpu.memory_space<vmem>>, vector<1x128xf32>
    %4 = vector.broadcast %3 : vector<1x128xf32> to vector<8x128xf32>
    %5 = arith.addf %2, %4 : vector<8x128xf32>
    %6 = vector.extract_strided_slice %5 {offsets = [0, 0], sizes = [8, 4], strides = [1, 1]} : vector<8x128xf32> to vector<8x4xf32>
    %c0_5 = arith.constant 0 : index
    %c0_6 = arith.constant 0 : index
    %7 = vector.load %arg4[%c0_5, %c0_6] : memref<8x4xf32, #tpu.memory_space<vmem>>, vector<8x4xf32>
    tpu.vector_store %arg4[%c0_5, %c0_6], %6 {strides = array<i32>} : memref<8x4xf32, #tpu.memory_space<vmem>>, vector<8x4xf32>,
    return
  }
  func.func @transform_0(%arg0: i32) -> (i32, i32) {
    %c0_i32 = arith.constant 0 : i32
    %c0_i32_0 = arith.constant 0 : i32
    return %arg0, %c0_i32 : i32, i32
  }
  func.func @transform_1(%arg0: i32) -> (i32, i32) {
    %c0_i32 = arith.constant 0 : i32
    %c0_i32_0 = arith.constant 0 : i32
    %c0_i32_1 = arith.constant 0 : i32
    return %c0_i32, %c0_i32_0 : i32, i32
  }
  func.func @transform_2(%arg0: i32) -> (i32, i32) {
    %c0_i32 = arith.constant 0 : i32
    %c0_i32_0 = arith.constant 0 : i32
    %c0_i32_1 = arith.constant 0 : i32
    return %c0_i32, %c0_i32_0 : i32, i32
  }
  func.func @transform_3(%arg0: i32) -> (i32, i32) {
    %c0_i32 = arith.constant 0 : i32
    %c0_i32_0 = arith.constant 0 : i32
    return %arg0, %c0_i32 : i32, i32
  }
}

</mosaic_0001>

<bundles_post_ra>
// kernel: tpu_custom_call.1
= control target key start
LH: loop header
LB: loop body
LE: loop exit
PB: predicated region body
PF: predicated region fallthrough
CT: control target
= control target key end

     0   :  { %8 = vsyncpa [#allocation3], 0  ;;  %s610_s0 = inlined_call_operand.hbm [shape: f32[16,32], index: 0, kind: input, shape index: {}]   ;;  %s611_s1 = inlined_call_operand.hbm [shape: f32[32,128], index: 1, kind: input, shape index: {}]   ;;  %s612_s2 = inlined_call_operand.vmem [shape: f32[1,128], index: 2, kind: input, shape index: {}]   ;;  %s613_s3 = inlined_call_operand.vmem [shape: f32[16,4], index: 3, kind: output, shape index: {}]  }
   0x1   :  { %10 = vsyncpa [#allocation3 + $0x1], 0 }
   0x2   :  { %11 = vsyncpa [#allocation5], 0  ;;  %s504_s12 = smov 0   ;;  %s506_s13 = smov 0  }
   0x3   :  { %s508_s14 = smov 0   ;;  %s510_s15 = smov 0  }
   0x4 LB: > { %s127_s18 = sshll.u32 %s611_s1, 4  ;;  %s526_s19 = sadd.s32 4294967295, %s479_s15   ;;  %s479_s15 = sphi %s510_s15, %s620_s15   ;;  %s475_s14 = sphi %s508_s14, %s619_s14   ;;  %s471_s13 = sphi %s506_s13, %s618_s13   ;;  %s467_s12 = sphi %s504_s12, %s617_s12   ;;  %s128_s18 = int_to_ptr.hbm [resolvable:$true] %s127_s18 }
   0x5   : > { %p316_p0 = scmp.ge.s32.totalorder %s479_s15, 1  ;;  %p38_p1 = scmp.eq.s32.totalorder %s526_s19, 0 }
   0x6   : > { %p116_p2 = scmp.lt.s32.totalorder %s479_s15, 3  ;;  %s481_s21 = smov [#allocation4]  }
   0x7   : > { %s129_s22 = sshll.u32 %s481_s21, 4  ;;  %s482_s23 = smov 128   ;;  %s130_s22 = int_to_ptr.vmem [resolvable:$true] %s129_s22 }
   0x8   : > { %p531_p3 = pnand %p316_p0, %p116_p2  ;;  %s483_s24 = smov 8  }
   0x9   : > { %s540_s25 = sadd.s32 1, %s479_s15   ;;  %s24_s27 = sadd.s32 1, %s475_s14 }
   0xa   : > { %p334_p4 = pneg %p531_p3  ;;  %s21_s26 = ssub.s32 %s479_s15, %s540_s25 }
   0xb   : > { %p22_p6 = scmp.eq.s32.totalorder %s21_s26, 0  ;;  %p31_p7 = scmp.ne.s32.totalorder %s475_s14, %s471_s13 }
   0xc   : > { %p335_p5 = pnand %p334_p4, %p38_p1  ;;  %p32_p8 = scmp.eq.s32.totalorder %s479_s15, 0 }
   0xd   : > { %p37_p9 = scmp.ne.s32.totalorder %s471_s13, %s467_s12  ;;  %p343_p12 = scmp.lt.s32.totalorder %s479_s15, 2 }
   0xe   : > { %337 = dma.hbm_to_vmem [thread:$0]  (!%p335_p5), %s128_s18, 512, %s130_s22, [#allocation5], %s482_s23, %s482_s23, %s483_s24  }
   0xf   : > { %s550_s28 = scalar_select %p22_p6, %s475_s14, %s24_s27  }
  0x10   : > { %p33_p10 = por %p32_p8, %p31_p7  ;;  %p554_p11 = por %p38_p1, %p37_p9 }
  0x11   : > { %s146_s30 = sand.u32 1, %s475_s14   ;;  %s320_s5 = sshll.u32 %s479_s15, 3 }
  0x12   : > { %s319_s4 = sshll.u32 %s146_s30, 3  ;;  %s154_s8 = scalar_lea.hbm %s610_s0, %s320_s5 }
  0x13   : > { %s150_s9 = scalar_lea.vmem [#allocation2], %s319_s4  ;;  %s156_s11 = sshll.u32 %s154_s8, 4  ;;  %s157_s11 = int_to_ptr.hbm [resolvable:$true] %s156_s11 }
  0x14   : > { %s158_s10 = sshll.u32 %s150_s9, 4  ;;  %p564_p13 = pnand %p343_p12, %p33_p10  ;;  %s159_s10 = int_to_ptr.vmem [resolvable:$true] %s158_s10 }
  0x15   : > { %s147_s16 = scalar_lea.sflag [#allocation3], %s146_s30  ;;  %s411_s17 = sshra.s32 %s157_s11, 4  ;;  %s412_s17 = int_to_ptr.hbm [resolvable:$true] %s411_s17 }
  0x16   : > { %s413_s18 = scalar_lea.hbm %s412_s17, 8  ;;  %p415_p2 = pneg %p564_p13 }
  0x17   : > { %p414_p0 = scmp.ne.s32.totalorder %s412_s17, %s413_s18  ;;  %s418_s22 = scalar_lea.hbm %s610_s0, 16 }
  0x18   : > { %p419_p6 = scmp.lt.s32.totalorder %s412_s17, %s610_s0  ;;  %p420_p7 = scmp.lt.s32.totalorder %s418_s22, %s413_s18 }
  0x19   : > { %p416_p4 = pnand %p415_p2, %p414_p0 }
  0x1a   : > { %p421_p8 = por %p420_p7, %p419_p6 }
  0x1b   : > { %p417_p5 = pneg %p416_p4 }
  0x1d   : > { %p422_p9 = pnand %p421_p8, %p417_p5 }
  0x1f   : > { %425 = shalt.err (!%p422_p9)
}
  0x20   : > { %341 = dma.hbm_to_vmem [thread:$0]  (!%p564_p13), %s157_s11, 128, %s159_s10, %s147_s16  }
  0x21   : > { %167 = sbr.rel (%p531_p3) target bundleno = 178 (0xb2), region = 32  ;;  %s169_s26 = sand.u32 (!%p531_p3), 1, %s471_s13  }
  0x22   : > { %s322_s27 = sshll.u32 (!%p531_p3), %s169_s26, 3  ;;  %s170_s30 = scalar_lea.sflag (!%p531_p3), [#allocation3], %s169_s26 }
  0x23   : > { %s173_s4 = scalar_lea.vmem (!%p531_p3), [#allocation2], %s322_s27 }
  0x26   : > { %458 = dma.done.wait (%p554_p11), %s170_s30, 128  }
  0x27   : > { %460 = vsyncadd (%p554_p11), %s170_s30, 4294967168 }
  0x28   : > { %462 = dma.done.wait (%p38_p1), [#allocation5], 512  }
  0x29   : > { %464 = vsyncadd (%p38_p1), [#allocation5], 4294966784  ;;  %v209_v0 = vld [vmem:[#allocation4 + $0x18] sm:$0xff]  ;;  %v208_v1 = vld [vmem:[#allocation4 + $0x10] sm:$0xff]  ;;  %vm214_vm0 = vcmask 261120   ;;  %p201_p3 = scmp.lt.s32.totalorder %s526_s19, 1 }
  0x2a   : > { %230 = vmatpush.msra.mxu0 %v209_v0  ;;  %v207_v2 = vld [vmem:[#allocation4 + $0x8] sm:$0xff]  ;;  %v206_v3 = vld [vmem:[#allocation4] sm:$0xff]  ;;  %v205_v4 = vld [vmem:[%s173_s4] sm:$0xff]  ;;  %vm238_vm1 = vcmask 31744  }
  0x2b   : > { %s622_s19 = smov (!%p201_p3, %s526_s19), 1  ;;  %v380_v5 = vld [vmem:[%s612_s2] ss:$0 sm:$0xff] }
  0x2c   : > { %231 = vmatpush.msra.mxu0 %v208_v1  ;;  %s324_s20 = sshll.u32 %s622_s19, 3 }
  0x2d   : > { %s204_s8 = scalar_lea.vmem %s613_s3, %s324_s20 }
  0x2e   : > { %232 = vmatpush.msra.mxu0 %v207_v2 }
  0x30   : > { %233 = vmatpush.msra.mxu0 %v206_v3 }
  0x31   : > { %325 = vmatmul.msk.f32.vlgmr.msra.gmra.mxu0 %vm214_vm0, %v205_v4 }
  0xae   : > { %v235_v6 = vpop.f32.mrf.mxu0 }
  0xaf   : > { %v236_v7 = vadd.f32 %v380_v5, %v235_v6 }
  0xb1   : > { %239 = vst.msk [vmem:[%s204_s8] sm:$0xff] %vm238_vm1, %v236_v7 }
  0xb2 PF: > { %p14_p1 = scmp.ge.s32.totalorder %s540_s25, 4   ;;  %s617_s12 = smov %s471_s13 }
  0xb3   : > { %s618_s13 = smov %s475_s14  ;;  %s619_s14 = smov %s550_s28 }
  0xb4   : > { %s620_s15 = smov %s540_s25  ;;  %16 = sbr.rel (!%p14_p1) target bundleno = 4 (0x4), region = 76 }
  0xb9   :  { %259 = vsyncpa [#allocation3], 1 }
  0xba   :  { %261 = vsyncpa [#allocation3 + $0x1], 1 }
  0xbb   :  { %262 = vsyncpa [#allocation5], 1 }

</bundles_post_ra>
